<compile_context>
chip_gen: v7x
topology: tpu7x:2x2x1
jax: 0.10.0
libtpu: 0.0.40
codegen_flags: <defaults>
</compile_context>

<pallas_src>
import functools

import jax
import jax.numpy as jnp
from jax.experimental import pallas as pl
from jax.experimental.pallas import tpu as pltpu


def _conv_bn_lrelu_kernel(x_ref, w_ref, b_ref, o_ref, *,
                          k, s, d, bh, W_out, C1, bc, neg_slope):
    # x_ref: (1, H_pad, W_pad, C1)  padded NHWC image of batch n (resident per n)
    # w_ref: (k*k*C1, bc)           im2col weights with BN scale folded in
    # b_ref: (1, bc)                folded BN bias
    # o_ref: (1, bh, W_out, bc)     output tile
    hi = pl.program_id(2)
    h0 = pl.multiple_of(hi * (bh * s), bh * s)

    # Read only the input rows this tile needs.
    h_span = (bh - 1) * s + (k - 1) * d + 1
    xh = x_ref[0, pl.ds(h0, h_span), :, :]                  # (h_span, W_pad, C1)

    # In-kernel im2col: gather the k*k taps and fuse them into the
    # contraction axis -> single MXU matmul with K = k*k*C1.
    parts = []
    for kh in range(k):
        for kw in range(k):
            tap = jax.lax.slice(
                xh,
                (kh * d, kw * d, 0),
                (kh * d + (bh - 1) * s + 1,
                 kw * d + (W_out - 1) * s + 1,
                 C1),
                (s, s, 1))                                   # (bh, W_out, C1)
            parts.append(tap)
    xcol = jnp.concatenate(parts, axis=-1)                   # (bh, W_out, k*k*C1)
    xcol = xcol.reshape(bh * W_out, k * k * C1)

    acc = jnp.dot(xcol, w_ref[...], preferred_element_type=jnp.float32)

    y = acc + b_ref[...]                                     # folded BN bias
    y = jnp.where(y >= 0, y, neg_slope * y)                  # LeakyReLU(0.1)
    o_ref[...] = y.reshape(1, bh, W_out, bc).astype(o_ref.dtype)


def _pick_block_h(H_out, W_out, target_rows):
    best = 1
    for cand in range(1, H_out + 1):
        if H_out % cand == 0 and cand * W_out <= target_rows:
            best = cand
    return best


def conv_bn_lrelu(x_nchw, weight, gamma, beta, running_mean, running_var,
                  *, k=1, p=0, s=1, d=1, eps=1e-5, neg_slope=0.1,
                  block_h=None, target_rows=512):
    """Forward of Conv(c1, c2, k, p, s, d, act='lrelu', norm='BN', depthwise=False).

    x_nchw: (N, C1, H, W) float32; weight: (C2, C1, k, k) (PyTorch layout).
    BatchNorm is applied in eval mode using the given running stats.
    Returns (N, C2, H_out, W_out).
    """
    N, C1, H, W = x_nchw.shape
    C2 = weight.shape[0]
    H_out = (H + 2 * p - d * (k - 1) - 1) // s + 1
    W_out = (W + 2 * p - d * (k - 1) - 1) // s + 1
    H_pad, W_pad = H + 2 * p, W + 2 * p

    # Lane-dense output: pad Cout to a multiple of 128, slice off afterwards.
    C2p = ((C2 + 127) // 128) * 128
    bc = 256 if (C2p % 256 == 0) else 128

    if block_h is None or H_out % block_h != 0:
        block_h = _pick_block_h(H_out, W_out, target_rows)
    bh = block_h

    # Wrapper glue: NCHW -> NHWC + zero spatial padding.
    x = jnp.transpose(x_nchw, (0, 2, 3, 1)).astype(jnp.float32)
    x = jnp.pad(x, ((0, 0), (p, p), (p, p), (0, 0)))

    # Weights: (C2, C1, k, k) -> (k, k, C1, C2) -> (k*k*C1, C2) matching the
    # im2col tap order; fold BN scale into the weights; pad Cout channels.
    scale = gamma / jnp.sqrt(running_var + eps)
    bias = beta - running_mean * scale
    w2 = jnp.transpose(weight, (2, 3, 1, 0)).reshape(k * k * C1, C2)
    w2 = (w2 * scale[None, :]).astype(jnp.float32)
    w2 = jnp.pad(w2, ((0, 0), (0, C2p - C2)))
    b2 = jnp.pad(bias.astype(jnp.float32), (0, C2p - C2)).reshape(1, C2p)

    kernel = functools.partial(
        _conv_bn_lrelu_kernel,
        k=k, s=s, d=d, bh=bh, W_out=W_out, C1=C1, bc=bc, neg_slope=neg_slope)

    grid = (N, C2p // bc, H_out // bh)

    flops = 2 * N * H_out * W_out * (k * k * C1) * C2p
    bytes_accessed = 4 * (N * H_pad * W_pad * C1 + k * k * C1 * C2p + C2p
                          + N * H_out * W_out * C2p)

    out_nhwc = pl.pallas_call(
        kernel,
        out_shape=jax.ShapeDtypeStruct((N, H_out, W_out, C2p), jnp.float32),
        grid=grid,
        in_specs=[
            # Padded image of batch n; block index changes only with n.
            pl.BlockSpec((1, H_pad, W_pad, C1), lambda n, co, hi: (n, 0, 0, 0)),
            # Weights / bias resident across batch and spatial grid axes.
            pl.BlockSpec((k * k * C1, bc), lambda n, co, hi: (0, co)),
            pl.BlockSpec((1, bc), lambda n, co, hi: (0, co)),
        ],
        out_specs=pl.BlockSpec((1, bh, W_out, bc),
                               lambda n, co, hi: (n, hi, 0, co)),
        compiler_params=pltpu.CompilerParams(
            dimension_semantics=("parallel", "parallel", "parallel"),
            vmem_limit_bytes=48 * 1024 * 1024),
        cost_estimate=pl.CostEstimate(
            flops=flops, transcendentals=0, bytes_accessed=bytes_accessed),
    )(x, w2, b2)

    out_nhwc = out_nhwc[..., :C2]
    return jnp.transpose(out_nhwc, (0, 3, 1, 2))  # NHWC -> NCHW


def _reference(x_nchw, weight, gamma, beta, running_mean, running_var,
               *, k, p, s, d, eps=1e-5, neg_slope=0.1):
    y = jax.lax.conv_general_dilated(
        x_nchw, weight, window_strides=(s, s), padding=[(p, p), (p, p)],
        rhs_dilation=(d, d), dimension_numbers=("NCHW", "OIHW", "NCHW"))
    scale = gamma / jnp.sqrt(running_var + eps)
    bias = beta - running_mean * scale
    y = y * scale[None, :, None, None] + bias[None, :, None, None]
    return jnp.where(y >= 0, y, neg_slope * y)


if __name__ == "__main__":
    # Conv(c1=4, c2=8, k=3, p=1, s=1, d=1, act='lrelu', norm='BN', depthwise=False)
    c1, c2, k, p, s, d = 4, 8, 3, 1, 1, 1
    N, H, W = 2, 16, 16

    key = jax.random.PRNGKey(0)
    kx, kw, kg, kb, km, kv = jax.random.split(key, 6)

    x = jax.random.normal(kx, (N, c1, H, W), dtype=jnp.float32)
    weight = 0.1 * jax.random.normal(kw, (c2, c1, k, k), dtype=jnp.float32)
    gamma = 1.0 + 0.1 * jax.random.normal(kg, (c2,), dtype=jnp.float32)
    beta = 0.1 * jax.random.normal(kb, (c2,), dtype=jnp.float32)
    running_mean = 0.1 * jax.random.normal(km, (c2,), dtype=jnp.float32)
    running_var = jnp.abs(jax.random.normal(kv, (c2,), dtype=jnp.float32)) + 0.5

    out = conv_bn_lrelu(x, weight, gamma, beta, running_mean, running_var,
                        k=k, p=p, s=s, d=d, block_h=8)
    out = jax.block_until_ready(out)

    ref = _reference(x, weight, gamma, beta, running_mean, running_var,
                     k=k, p=p, s=s, d=d)
    assert out.shape == ref.shape
    assert jnp.allclose(out, ref, atol=1e-4, rtol=1e-4)

    print("KERNEL_OK")
</pallas_src>

<mosaic_0001>
module attributes {stable_mosaic.version = 11 : i64} {
  func.func @_conv_bn_lrelu_kernel(%arg0: i32, %arg1: i32, %arg2: i32, %arg3: memref<1x18x18x4xf32, #tpu.memory_space<vmem>>, %arg4: memref<36x128xf32, #tpu.memory_space<vmem>>, %arg5: memref<1x128xf32, #tpu.memory_space<vmem>>, %arg6: memref<1x8x16x128xf32, #tpu.memory_space<vmem>>) attributes {dimension_semantics = [#tpu.dimension_semantics<parallel>, #tpu.dimension_semantics<parallel>, #tpu.dimension_semantics<parallel>], iteration_bounds = array<i64: 2, 1, 2>, scalar_prefetch = 0 : i64, scratch_operands = 0 : i64, tpu.core_type = #tpu.core_type<tc>, window_params = [{transform_indices = @transform_0, window_bounds = array<i64: 1, 18, 18, 4>}, {transform_indices = @transform_1, window_bounds = array<i64: 36, 128>}, {transform_indices = @transform_2, window_bounds = array<i64: 1, 128>}, {transform_indices = @transform_3, window_bounds = array<i64: 1, 8, 16, 128>}]} {
    %c8_i32 = arith.constant 8 : i32
    %0 = arith.muli %arg2, %c8_i32 : i32
    %1 = tpu.assume_multiple %0, 8 : i32
    %c0 = arith.constant 0 : index
    %2 = arith.index_cast %1 : i32 to index
    %c0_0 = arith.constant 0 : index
    %c0_1 = arith.constant 0 : index
    %3 = vector.load %arg3[%c0, %2, %c0_0, %c0_1] : memref<1x18x18x4xf32, #tpu.memory_space<vmem>>, vector<1x10x18x4xf32>
    %4 = vector.shape_cast %3 : vector<1x10x18x4xf32> to vector<10x18x4xf32>
    %5 = vector.extract_strided_slice %4 {offsets = [0, 0, 0], sizes = [8, 16, 4], strides = [1, 1, 1]} : vector<10x18x4xf32> to vector<8x16x4xf32>
    %6 = vector.extract_strided_slice %4 {offsets = [0, 1, 0], sizes = [8, 16, 4], strides = [1, 1, 1]} : vector<10x18x4xf32> to vector<8x16x4xf32>
    %7 = vector.extract_strided_slice %4 {offsets = [0, 2, 0], sizes = [8, 16, 4], strides = [1, 1, 1]} : vector<10x18x4xf32> to vector<8x16x4xf32>
    %8 = vector.extract_strided_slice %4 {offsets = [1, 0, 0], sizes = [8, 16, 4], strides = [1, 1, 1]} : vector<10x18x4xf32> to vector<8x16x4xf32>
    %9 = vector.extract_strided_slice %4 {offsets = [1, 1, 0], sizes = [8, 16, 4], strides = [1, 1, 1]} : vector<10x18x4xf32> to vector<8x16x4xf32>
    %10 = vector.extract_strided_slice %4 {offsets = [1, 2, 0], sizes = [8, 16, 4], strides = [1, 1, 1]} : vector<10x18x4xf32> to vector<8x16x4xf32>
    %11 = vector.extract_strided_slice %4 {offsets = [2, 0, 0], sizes = [8, 16, 4], strides = [1, 1, 1]} : vector<10x18x4xf32> to vector<8x16x4xf32>
    %12 = vector.extract_strided_slice %4 {offsets = [2, 1, 0], sizes = [8, 16, 4], strides = [1, 1, 1]} : vector<10x18x4xf32> to vector<8x16x4xf32>
    %13 = vector.extract_strided_slice %4 {offsets = [2, 2, 0], sizes = [8, 16, 4], strides = [1, 1, 1]} : vector<10x18x4xf32> to vector<8x16x4xf32>
    %14 = tpu.concatenate %5, %6, %7, %8, %9, %10, %11, %12, %13 in 2 : vector<8x16x4xf32>, vector<8x16x4xf32>, vector<8x16x4xf32>, vector<8x16x4xf32>, vector<8x16x4xf32>, vector<8x16x4xf32>, vector<8x16x4xf32>, vector<8x16x4xf32>, vector<8x16x4xf32> -> vector<8x16x36xf32>
    %15 = vector.shape_cast %14 : vector<8x16x36xf32> to vector<128x36xf32>
    %c0_2 = arith.constant 0 : index
    %c0_3 = arith.constant 0 : index
    %16 = vector.load %arg4[%c0_2, %c0_3] : memref<36x128xf32, #tpu.memory_space<vmem>>, vector<36x128xf32>
    %cst = arith.constant dense<0.000000e+00> : vector<128x128xf32>
    %17 = tpu.matmul %15, %16, %cst {dimension_numbers = #tpu.dot_dimension_numbers<[1], [0], [0], [1], [0, 0, 1, 1], [], []>} : vector<128x36xf32>, vector<36x128xf32>, vector<128x128xf32> -> vector<128x128xf32>
    %c0_4 = arith.constant 0 : index
    %c0_5 = arith.constant 0 : index
    %18 = vector.load %arg5[%c0_4, %c0_5] : memref<1x128xf32, #tpu.memory_space<vmem>>, vector<1x128xf32>
    %19 = vector.broadcast %18 : vector<1x128xf32> to vector<128x128xf32>
    %20 = arith.addf %17, %19 : vector<128x128xf32>
    %cst_6 = arith.constant 0.000000e+00 : f32
    %21 = vector.broadcast %cst_6 : f32 to vector<128x128xf32>
    %22 = arith.cmpf oge, %20, %21 : vector<128x128xf32>
    %cst_7 = arith.constant 1.000000e-01 : f32
    %23 = vector.broadcast %cst_7 : f32 to vector<128x128xf32>
    %24 = arith.mulf %23, %20 : vector<128x128xf32>
    %25 = arith.select %22, %20, %24 : vector<128x128xi1>, vector<128x128xf32>
    %26 = vector.shape_cast %25 : vector<128x128xf32> to vector<1x8x16x128xf32>
    %c0_8 = arith.constant 0 : index
    %c0_9 = arith.constant 0 : index
    %c0_10 = arith.constant 0 : index
    %c0_11 = arith.constant 0 : index
    %27 = vector.load %arg6[%c0_8, %c0_9, %c0_10, %c0_11] : memref<1x8x16x128xf32, #tpu.memory_space<vmem>>, vector<1x8x16x128xf32>
    tpu.vector_store %arg6[%c0_8, %c0_9, %c0_10, %c0_11], %26 {strides = array<i32>} : memref<1x8x16x128xf32, #tpu.memory_space<vmem>>, vector<1x8x16x128xf32>,
    return
  }
  func.func @transform_0(%arg0: i32, %arg1: i32, %arg2: i32) -> (i32, i32, i32, i32) {
    %c0_i32 = arith.constant 0 : i32
    %c0_i32_0 = arith.constant 0 : i32
    %c0_i32_1 = arith.constant 0 : i32
    %c0_i32_2 = arith.constant 0 : i32
    return %arg0, %c0_i32, %c0_i32_0, %c0_i32_1 : i32, i32, i32, i32
  }
  func.func @transform_1(%arg0: i32, %arg1: i32, %arg2: i32) -> (i32, i32) {
    %c0_i32 = arith.constant 0 : i32
    %c0_i32_0 = arith.constant 0 : i32
    return %c0_i32, %arg1 : i32, i32
  }
  func.func @transform_2(%arg0: i32, %arg1: i32, %arg2: i32) -> (i32, i32) {
    %c0_i32 = arith.constant 0 : i32
    %c0_i32_0 = arith.constant 0 : i32
    return %c0_i32, %arg1 : i32, i32
  }
  func.func @transform_3(%arg0: i32, %arg1: i32, %arg2: i32) -> (i32, i32, i32, i32) {
    %c0_i32 = arith.constant 0 : i32
    %c0_i32_0 = arith.constant 0 : i32
    return %arg0, %arg2, %c0_i32, %arg1 : i32, i32, i32, i32
  }
}

</mosaic_0001>

<bundles_post_ra>
// kernel: tpu_custom_call.1
= control target key start
LH: loop header
LB: loop body
LE: loop exit
PB: predicated region body
PF: predicated region fallthrough
CT: control target
= control target key end

     0   :  { %8 = vsyncpa [#allocation3], 0  ;;  %s2450_s0 = inlined_call_operand.vmem [shape: f32[2,18,18,4], index: 0, kind: input, shape index: {}]   ;;  %s2451_s1 = inlined_call_operand.vmem [shape: f32[36,128], index: 1, kind: input, shape index: {}]   ;;  %s2452_s2 = inlined_call_operand.vmem [shape: f32[1,128], index: 2, kind: input, shape index: {}]   ;;  %s2453_s3 = inlined_call_operand.hbm [shape: f32[2,16,16,128], index: 3, kind: output, shape index: {}]  }
   0x1   :  { %10 = vsyncpa [#allocation3 + $0x1], 0  ;;  %s1623_s12 = smov 0   ;;  %s1625_s13 = smov 0  }
   0x2   :  { %s1627_s14 = smov 0   ;;  %s1629_s15 = smov 0  }
   0x3   :  { %s1631_s16 = smov 0   ;;  %s1633_s17 = smov 0  }
   0x4   :  { %s1635_s18 = smov 0   ;;  %s1637_s19 = smov 0  }
   0x5 LB: > { %s1310_s20 = sadd.s32 4294967295, %s1591_s19   ;;  %s1311_s21 = sadd.s32 4294967294, %s1591_s19   ;;  %s1591_s19 = sphi %s1637_s19, %s16_s19   ;;  %s1587_s18 = sphi %s1635_s18, %s2489_s18   ;;  %s1583_s17 = sphi %s1633_s17, %s2488_s17   ;;  %s1579_s16 = sphi %s1631_s16, %s2487_s16   ;;  %s1575_s15 = sphi %s1629_s15, %s2486_s15   ;;  %s1571_s14 = sphi %s1627_s14, %s2485_s14   ;;  %s1567_s13 = sphi %s1625_s13, %s2484_s13   ;;  %s1563_s12 = sphi %s1623_s12, %s2483_s12  }
   0x6   : > { %s28_s22 = sadd.s32 1, %s1583_s17  ;;  %s35_s23 = sadd.s32 1, %s1587_s18 }
   0x7   : > { %p29_p0 = scmp.ge.s32.totalorder %s28_s22, 2  ;;  %p134_p1 = scmp.ne.s32.totalorder %s1571_s14, %s1567_s13 }
   0x8   : > { %p135_p2 = scmp.eq.s32.totalorder %s1310_s20, 3  ;;  %p140_p5 = scmp.ne.s32.totalorder %s1567_s13, %s1563_s12 }
   0x9   : > { %s2491_s22 = smov (%p29_p0, %s28_s22), 0  ;;  %s2493_s23 = smov (!%p29_p0, %s35_s23), %s1587_s18 }
   0xa   : > { %s118_s24 = ssub.s32 %s1583_s17, %s2491_s22  ;;  %p1674_p3 = por %p135_p2, %p134_p1 }
   0xb   : > { %p37_p4 = scmp.ge.s32.totalorder %s2493_s23, 2  ;;  %p141_p6 = scmp.eq.s32.totalorder %s1311_s21, 3 }
   0xc   : > { %p1316_p7 = scmp.ge.s32.totalorder %s1591_s19, 1  ;;  %p180_p9 = scmp.lt.s32.totalorder %s1591_s19, 5 }
   0xd   : > { %s2495_s23 = smov (%p37_p4, %s2493_s23), 0  ;;  %p1683_p8 = por %p141_p6, %p140_p5 }
   0xe   : > { %s117_s27 = ssub.s32 %s1587_s18, %s2495_s23  ;;  %s124_s28 = sadd.s32 1, %s1571_s14 }
   0xf   : > { %s119_s29 = sor.u32 %s118_s24, %s117_s27  ;;  %p181_p10 = pnand %p1316_p7, %p180_p9 }
  0x10   : > { %p122_p11 = scmp.eq.s32.totalorder %s119_s29, 0 }
  0x11   : > { %184 = sbr.rel (%p181_p10) target bundleno = 638 (0x27e), region = 32 }
  0x12   : > { %s1692_s30 = scalar_select %p122_p11, %s1571_s14, %s124_s28  }
  0x18   : > { %p211_p12 = scmp.lt.s32.totalorder %s1579_s16, 1  ;;  %s1320_s5 = smul.u32 192, %s1575_s15  ;;  %vm281_vm0 = vcmask 1046528   ;;  %vm370_vm1 = vcmask 1045504   ;;  %vm970_vm2 = vcmask 1043456   ;;  %vm773_vm3 = vcmask 31744  }
  0x19   : > { %s1593_s11 = smov 4   ;;  %s1594_s20 = smov 8   ;;  %vm790_vm4 = vcmask 64512   ;;  %vm807_vm5 = vcmask 97280   ;;  %vm824_vm6 = vcmask 130048   ;;  %vm841_vm7 = vcmask 162816  }
  0x1a   : > { %s212_s4 = scalar_select %p211_p12, %s1579_s16, 1  ;;  %vm858_vm8 = vcmask 195584   ;;  %vm875_vm9 = vcmask 228352   ;;  %vm892_vm10 = vcmask 261120   ;;  %vm921_vm11 = vcmask 293888  }
  0x1b   : > { %s1595_s21 = smov 12   ;;  %s1596_s24 = smov 16  }
  0x1c   : > { %s1416_s6 = smul.u32 432, %s212_s4  ;;  %s1597_s27 = smov 20  }
  0x1d   : > { %s1598_s28 = smov 24   ;;  %s1599_s29 = smov 28  }
  0x1e   : > { %s215_s9 = scalar_lea.vmem %s2450_s0, %s1416_s6  ;;  %s1600_s6 = smov 32  }
  0x1f   : > { %s1700_s10 = scalar_lea.vmem %s215_s9, %s1320_s5 }
  0x20   : > { %v1703_v0 = vld [vmem:[%s1700_s10 + $0x8] sm:$0xff]  ;;  %v229_v1 = vld [vmem:[%s1700_s10 + $0x10] sm:$0x3]  ;;  %v1707_v2 = vld [vmem:[%s1700_s10] sm:$0xff] }
  0x21   : > { %v283_v3 = vrot.slane %v1703_v0, 1  ;;  %v285_v4 = vrot.slane %v229_v1, 1  ;;  %v282_v5 = vrot.slane %v1707_v2, 1  ;;  %v1712_v6 = vld [vmem:[%s1700_s10 + $0x68] sm:$0xff]  ;;  %v241_v7 = vld [vmem:[%s1700_s10 + $0x70] sm:$0x3] }
  0x22   : > { %v303_v8 = vrot.slane %v1712_v6, 1  ;;  %v305_v9 = vrot.slane %v241_v7, 1  ;;  %v1717_v10 = vld [vmem:[%s1700_s10 + $0x60] sm:$0xff]  ;;  %v392_v14 = vrot.slane %v1712_v6, 2  ;;  %v371_v15 = vrot.slane %v1707_v2, 2  ;;  %v1753_v26 = vld [vmem:[%s1700_s10 + $0x78] sm:$0xff] }
  0x23   : > { %v286_v11 = vsel %vm281_vm0, %v283_v3, %v285_v4  ;;  %v284_v12 = vsel %vm281_vm0, %v282_v5, %v283_v3  ;;  %v302_v13 = vrot.slane %v1717_v10, 1  ;;  %v391_v18 = vrot.slane %v1717_v10, 2  ;;  %v1756_v27 = vld [vmem:[%s1700_s10 + $0x18] sm:$0xff]  ;;  %v1759_v28 = vld [vmem:[%s1700_s10 + $0x80] sm:$0xff]  ;;  %v244_v36 = vld [vmem:[%s1700_s10 + $0x88] sm:$0x3] }
  0x24   : > { %324 = vrot.lane.b32.xlu1 %v286_v11, %s1593_s11  ;;  %322 = vrot.lane.b32.xlu0 %v284_v12, %s1593_s11  ;;  %v1727_v16 = vsel %vm281_vm0, %v303_v8, %v305_v9  ;;  %v372_v19 = vrot.slane %v1703_v0, 2  ;;  %v394_v22 = vrot.slane %v241_v7, 2  ;;  %v374_v23 = vrot.slane %v229_v1, 2  ;;  %v1762_v29 = vld [vmem:[%s1700_s10 + $0x20] sm:$0xff]  ;;  %v232_v37 = vld [vmem:[%s1700_s10 + $0x28] sm:$0x3] }
  0x25   : > { %v1730_v17 = vsel %vm281_vm0, %v302_v13, %v303_v8  ;;  %v1739_v20 = vsel %vm370_vm1, %v391_v18, %v392_v14  ;;  %v307_v30 = vrot.slane %v1753_v26, 1  ;;  %v308_v31 = vrot.slane %v1759_v28, 1  ;;  %v1820_v52 = vld [vmem:[%s1700_s10 + $0x90] sm:$0xff]  ;;  %v1833_v54 = vld [vmem:[%s1700_s10 + $0x98] sm:$0xff]  ;;  %v247_v62 = vld [vmem:[%s1700_s10 + $0xa0] sm:$0x3] }
  0x26   : > { %v373_v21 = vsel %vm370_vm1, %v371_v15, %v372_v19  ;;  %v1746_v24 = vsel %vm370_vm1, %v392_v14, %v394_v22  ;;  %v375_v25 = vsel %vm370_vm1, %v372_v19, %v374_v23  ;;  %v287_v32 = vrot.slane %v1756_v27, 1  ;;  %v1823_v53 = vld [vmem:[%s1700_s10 + $0x30] sm:$0xff]  ;;  %v1836_v55 = vld [vmem:[%s1700_s10 + $0x38] sm:$0xff]  ;;  %v235_v63 = vld [vmem:[%s1700_s10 + $0x40] sm:$0x3] }
  0x27   : > { %v288_v33 = vrot.slane %v1762_v29, 1  ;;  %v1777_v34 = vsel %vm281_vm0, %v307_v30, %v308_v31  ;;  %v310_v38 = vrot.slane %v244_v36, 1  ;;  %v290_v39 = vrot.slane %v232_v37, 1  ;;  %2469 = vst [vmem:[#allocation9_spill] sm:$0xff] %v1836_v55  ;;  %v909_v8 = vld [vmem:[%s2451_s1] sm:$0xff]  ;;  %v910_v9 = vld [vmem:[%s2451_s1 + $0x8] sm:$0xff] }
  0x28   : > { %340 = vrot.lane.b32.xlu1 %v1727_v16, %s1593_s11  ;;  %338 = vrot.lane.b32.xlu0 %v1730_v17, %s1593_s11  ;;  %2465 = vst [vmem:[#allocation5_spill] sm:$0xff] %v1777_v34  ;;  %v396_v40 = vrot.slane %v1753_v26, 2  ;;  %v397_v41 = vrot.slane %v1759_v28, 2  ;;  %v376_v44 = vrot.slane %v1756_v27, 2  ;;  %v377_v45 = vrot.slane %v1762_v29, 2  ;;  %v911_v15 = vld [vmem:[%s2451_s1 + $0x10] sm:$0xff] }
  0x29   : > { %v289_v35 = vsel %vm281_vm0, %v287_v32, %v288_v33  ;;  %v1791_v42 = vsel %vm281_vm0, %v308_v31, %v310_v38  ;;  %v291_v43 = vsel %vm281_vm0, %v288_v33, %v290_v39  ;;  %v399_v48 = vrot.slane %v244_v36, 2  ;;  %v912_v18 = vld [vmem:[%s2451_s1 + $0x18] sm:$0xff]  ;;  %v913_v23 = vld [vmem:[%s2451_s1 + $0x20] sm:$0xf]  ;;  %v1906_v33 = vld [vmem:[%s1700_s10 + $0xa8] sm:$0xff] }
  0x2a   : > { %2466 = vst [vmem:[#allocation6_spill] sm:$0xff] %v1791_v42  ;;  %v1800_v46 = vsel %vm370_vm1, %v396_v40, %v397_v41  ;;  %v378_v47 = vsel %vm370_vm1, %v376_v44, %v377_v45  ;;  %v379_v49 = vrot.slane %v232_v37, 2  ;;  %v312_v56 = vrot.slane %v1820_v52, 1  ;;  %2470 = vst [vmem:[#allocation10_spill] sm:$0xff] %v1906_v33  ;;  %v1933_v44 = vld [vmem:[%s1700_s10 + $0x50] sm:$0xff] }
  0x2b   : > { %2467 = vst [vmem:[#allocation7_spill] sm:$0xff] %v1800_v46  ;;  %v1813_v50 = vsel %vm370_vm1, %v397_v41, %v399_v48  ;;  %v313_v57 = vrot.slane %v1833_v54, 1  ;;  %v292_v58 = vrot.slane %v1823_v53, 1  ;;  %v293_v59 = vrot.slane %v1836_v55, 1  ;;  %2473 = vst [vmem:[#allocation13_spill] sm:$0xff] %v1933_v44 }
  0x2c   : > { %427 = vrot.lane.b32.xlu1 %v1739_v20, %s1594_s20  ;;  %411 = vrot.lane.b32.xlu0 %v373_v21, %s1594_s20  ;;  %2468 = vst [vmem:[#allocation8_spill] sm:$0xff] %v1813_v50  ;;  %v380_v51 = vsel %vm370_vm1, %v377_v45, %v379_v49  ;;  %v315_v1 = vrot.slane %v247_v62, 1  ;;  %v295_v3 = vrot.slane %v235_v63, 1  ;;  %v401_v4 = vrot.slane %v1820_v52, 2 }
  0x2d   : > { %v314_v60 = vsel %vm281_vm0, %v312_v56, %v313_v57  ;;  %v294_v61 = vsel %vm281_vm0, %v292_v58, %v293_v59  ;;  %v402_v5 = vrot.slane %v1833_v54, 2  ;;  %v381_v7 = vrot.slane %v1823_v53, 2 }
  0x2e   : > { %v316_v11 = vsel %vm281_vm0, %v313_v57, %v315_v1  ;;  %v296_v12 = vsel %vm281_vm0, %v293_v59, %v295_v3  ;;  %v382_v13 = vrot.slane %v1836_v55, 2  ;;  %v1402_v14 = vpack.c.bf16 %v910_v9, %v909_v8 }
  0x2f   : > { %v403_v19 = vsel %vm370_vm1, %v401_v4, %v402_v5  ;;  %v1406_v22 = vpack.c.bf16 %v912_v18, %v911_v15  ;;  %v384_v30 = vrot.slane %v235_v63, 2  ;;  %v317_v45 = vrot.slane %v1906_v33, 1 }
  0x30   : > { %429 = vrot.lane.b32.xlu1 %v1746_v24, %s1594_s20  ;;  %413 = vrot.lane.b32.xlu0 %v375_v25, %s1594_s20  ;;  %v383_v21 = vsel %vm370_vm1, %v381_v7, %v382_v13  ;;  %v404_v25 = vrot.slane %v247_v62, 2  ;;  %v298_v49 = vrot.slane %v1933_v44, 1  ;;  %v238_v62 = vld [vmem:[%s1700_s10 + $0x58] sm:$0x3] }
  0x31   : > { %1403 = vmatprep.subr.bf16.mxu0 %v1402_v14  ;;  %1410 = vmatprep.subr.bf16.mxu1 %v1402_v14  ;;  %v385_v32 = vsel %vm370_vm1, %v382_v13, %v384_v30  ;;  %v300_v4 = vrot.slane %v238_v62, 1 }
  0x32   : > { %1405 = vmatpush3.bf16.msra.mxu0 %v1402_v14  ;;  %1413 = vmatpush3.bf16.msra.mxu1 %v1402_v14  ;;  %v405_v31 = vsel %vm370_vm1, %v402_v5, %v404_v25  ;;  %v387_v14 = vrot.slane %v1933_v44, 2 }
  0x33   : > { %1407 = vmatprep.subr.bf16.mxu0 %v1406_v22  ;;  %1411 = vmatprep.subr.bf16.mxu1 %v1406_v22  ;;  %v301_v9 = vsel %vm281_vm0, %v298_v49, %v300_v4 }
  0x34   : > { %477 = vrot.lane.b32.xlu1 %v1753_v26, %s1595_s21  ;;  %461 = vrot.lane.b32.xlu0 %v1756_v27, %s1595_s21 }
  0x36   : > { %1409 = vmatpush3.bf16.msra.mxu0 %v1406_v22  ;;  %1414 = vmatpush3.bf16.msra.mxu1 %v1406_v22 }
  0x37   : > { %1376 = vmatprep.subr.msk.mxu0 %vm970_vm2, %v913_v23  ;;  %1412 = vmatprep.subr.msk.mxu1 %vm970_vm2, %v913_v23 }
  0x38   : > { %479 = vrot.lane.b32.xlu1 %v1759_v28, %s1595_s21  ;;  %463 = vrot.lane.b32.xlu0 %v1762_v29, %s1595_s21 }
  0x3a   : > { %1377 = vmatpush3.msk.msra.mxu0 %vm970_vm2, %v913_v23  ;;  %1415 = vmatpush3.msk.msra.mxu1 %vm970_vm2, %v913_v23 }
  0x3c   : > { %531 = vrot.lane.b32.xlu1 %v1777_v34, %s1596_s24  ;;  %515 = vrot.lane.b32.xlu0 %v289_v35, %s1596_s24 }
  0x40   : > { %342 = vrot.lane.b32.xlu1 %v1777_v34, %s1593_s11  ;;  %326 = vrot.lane.b32.xlu0 %v289_v35, %s1593_s11  ;;  %v1909_v35 = vld [vmem:[%s1700_s10 + $0x48] sm:$0xff] }
  0x41   : > { %2471 = vst [vmem:[#allocation11_spill] sm:$0xff] %v1909_v35  ;;  %v297_v48 = vrot.slane %v1909_v35, 1  ;;  %v386_v13 = vrot.slane %v1909_v35, 2 }
  0x43   : > { %v299_v58 = vsel %vm281_vm0, %v297_v48, %v298_v49 }
  0x44   : > { %533 = vrot.lane.b32.xlu1 %v1791_v42, %s1596_s24  ;;  %517 = vrot.lane.b32.xlu0 %v291_v43, %s1596_s24 }
  0x48   : > { %584 = vrot.lane.b32.xlu1 %v1800_v46, %s1597_s27  ;;  %568 = vrot.lane.b32.xlu0 %v378_v47, %s1597_s27 }
  0x4c   : > { %344 = vrot.lane.b32.xlu1 %v1791_v42, %s1593_s11  ;;  %328 = vrot.lane.b32.xlu0 %v291_v43, %s1593_s11  ;;  %v1930_v43 = vld [vmem:[%s1700_s10 + $0xb0] sm:$0xff] }
  0x4d   : > { %2472 = vst [vmem:[#allocation12_spill] sm:$0xff] %v1930_v43 }
  0x50   : > { %431 = vrot.lane.b32.xlu1 %v1800_v46, %s1594_s20  ;;  %415 = vrot.lane.b32.xlu0 %v378_v47, %s1594_s20  ;;  %v318_v47 = vrot.slane %v1930_v43, 1 }
  0x52   : > { %v319_v57 = vsel %vm281_vm0, %v317_v45, %v318_v47 }
  0x54   : > { %586 = vrot.lane.b32.xlu1 %v1813_v50, %s1597_s27  ;;  %570 = vrot.lane.b32.xlu0 %v380_v51, %s1597_s27 }
  0x58   : > { %634 = vrot.lane.b32.xlu1 %v1820_v52, %s1598_s28  ;;  %618 = vrot.lane.b32.xlu0 %v1823_v53, %s1598_s28 }
  0x5c   : > { %433 = vrot.lane.b32.xlu1 %v1813_v50, %s1594_s20  ;;  %417 = vrot.lane.b32.xlu0 %v380_v51, %s1594_s20 }
  0x60   : > { %481 = vrot.lane.b32.xlu1 %v1820_v52, %s1595_s21  ;;  %465 = vrot.lane.b32.xlu0 %v1823_v53, %s1595_s21 }
  0x64   : > { %636 = vrot.lane.b32.xlu1 %v1833_v54, %s1598_s28  ;;  %620 = vrot.lane.b32.xlu0 %v1836_v55, %s1598_s28 }
  0x68   : > { %688 = vrot.lane.b32.xlu1 %v314_v60, %s1599_s29  ;;  %672 = vrot.lane.b32.xlu0 %v294_v61, %s1599_s29 }
  0x6c   : > { %483 = vrot.lane.b32.xlu1 %v1833_v54, %s1595_s21  ;;  %467 = vrot.lane.b32.xlu0 %v1836_v55, %s1595_s21 }
  0x70   : > { %535 = vrot.lane.b32.xlu1 %v314_v60, %s1596_s24  ;;  %519 = vrot.lane.b32.xlu0 %v294_v61, %s1596_s24 }
  0x74   : > { %690 = vrot.lane.b32.xlu1 %v316_v11, %s1599_s29  ;;  %674 = vrot.lane.b32.xlu0 %v296_v12, %s1599_s29 }
  0x78   : > { %741 = vrot.lane.b32.xlu1 %v403_v19, %s1600_s6  ;;  %725 = vrot.lane.b32.xlu0 %v383_v21, %s1600_s6 }
  0x7c   : > { %346 = vrot.lane.b32.xlu1 %v314_v60, %s1593_s11  ;;  %330 = vrot.lane.b32.xlu0 %v294_v61, %s1593_s11  ;;  %v250_v61 = vld [vmem:[%s1700_s10 + $0xb8] sm:$0x3] }
  0x7d   : > { %v320_v3 = vrot.slane %v250_v61, 1  ;;  %v409_v45 = vrot.slane %v250_v61, 2 }
  0x7f   : > { %v321_v8 = vsel %vm281_vm0, %v318_v47, %v320_v3  ;;  %v389_v47 = vrot.slane %v238_v62, 2 }
  0x80   : > { %537 = vrot.lane.b32.xlu1 %v316_v11, %s1596_s24  ;;  %521 = vrot.lane.b32.xlu0 %v296_v12, %s1596_s24 }
  0x84   : > { %588 = vrot.lane.b32.xlu1 %v403_v19, %s1597_s27  ;;  %572 = vrot.lane.b32.xlu0 %v383_v21, %s1597_s27 }
  0x88   : > { %743 = vrot.lane.b32.xlu1 %v405_v31, %s1600_s6  ;;  %727 = vrot.lane.b32.xlu0 %v385_v32, %s1600_s6 }
  0x8c   : > { %348 = vrot.lane.b32.xlu1 %v316_v11, %s1593_s11  ;;  %332 = vrot.lane.b32.xlu0 %v296_v12, %s1593_s11  ;;  %v406_v11 = vrot.slane %v1906_v33, 2  ;;  %v407_v12 = vrot.slane %v1930_v43, 2 }
  0x90   : > { %435 = vrot.lane.b32.xlu1 %v403_v19, %s1594_s20  ;;  %419 = vrot.lane.b32.xlu0 %v383_v21, %s1594_s20  ;;  %v408_v19 = vsel %vm370_vm1, %v406_v11, %v407_v12  ;;  %v388_v21 = vsel %vm370_vm1, %v386_v13, %v387_v14 }
  0x94   : > { %590 = vrot.lane.b32.xlu1 %v405_v31, %s1597_s27  ;;  %574 = vrot.lane.b32.xlu0 %v385_v32, %s1597_s27 }
  0x96   : > { %v1911_v36 = vpop.permute.xlu1 %324  ;;  %v1913_v37 = vpop.permute.xlu0 %322 }
  0x98   : > { %638 = vrot.lane.b32.xlu1 %v1906_v33, %s1598_s28  ;;  %622 = vrot.lane.b32.xlu0 %v1909_v35, %s1598_s28 }
  0x9a   : > { %v1919_v38 = vpop.permute.xlu1 %340  ;;  %v1921_v39 = vpop.permute.xlu0 %338 }
  0x9c   : > { %437 = vrot.lane.b32.xlu1 %v405_v31, %s1594_s20  ;;  %421 = vrot.lane.b32.xlu0 %v385_v32, %s1594_s20 }
  0x9e   : > { %v1925_v40 = vpop.permute.xlu1 %427  ;;  %v1927_v41 = vpop.permute.xlu0 %411 }
  0xa0   : > { %485 = vrot.lane.b32.xlu1 %v1906_v33, %s1595_s21  ;;  %469 = vrot.lane.b32.xlu0 %v1909_v35, %s1595_s21 }
  0xa2   : > { %v1943_v51 = vpop.permute.xlu1 %429  ;;  %v1945_v56 = vpop.permute.xlu0 %413 }
  0xa4   : > { %640 = vrot.lane.b32.xlu1 %v1930_v43, %s1598_s28  ;;  %624 = vrot.lane.b32.xlu0 %v1933_v44, %s1598_s28 }
  0xa6   : > { %v1953_v59 = vpop.permute.xlu1 %477  ;;  %v1955_v60 = vpop.permute.xlu0 %461 }
  0xa8   : > { %692 = vrot.lane.b32.xlu1 %v319_v57, %s1599_s29  ;;  %676 = vrot.lane.b32.xlu0 %v299_v58, %s1599_s29 }
  0xaa   : > { %v1961_v63 = vpop.permute.xlu1 %479  ;;  %v1963_v1 = vpop.permute.xlu0 %463 }
  0xac   : > { %487 = vrot.lane.b32.xlu1 %v1930_v43, %s1595_s21  ;;  %471 = vrot.lane.b32.xlu0 %v1933_v44, %s1595_s21  ;;  %v2045_v43 = vld [vmem:[%s1700_s10 + $0xc8] sm:$0xff] }
  0xad   : > { %v511_v46 = vrot.slane %v2045_v43, 1 }
  0xae   : > { %v1969_v5 = vpop.permute.xlu1 %531  ;;  %v1971_v7 = vpop.permute.xlu0 %515 }
  0xb0   : > { %539 = vrot.lane.b32.xlu1 %v319_v57, %s1596_s24  ;;  %523 = vrot.lane.b32.xlu0 %v299_v58, %s1596_s24 }
  0xb2   : > { %v343_v15 = vpop.permute.xlu1 %342  ;;  %v327_v18 = vpop.permute.xlu0 %326 }
  0xb3   : > { %v784_v35 = vsel %vm773_vm3, %v1753_v26, %v343_v15  ;;  %v776_v33 = vsel %vm773_vm3, %v1756_v27, %v327_v18 }
  0xb4   : > { %694 = vrot.lane.b32.xlu1 %v321_v8, %s1599_s29  ;;  %678 = vrot.lane.b32.xlu0 %v301_v9, %s1599_s29 }
  0xb6   : > { %v1985_v22 = vpop.permute.xlu1 %533  ;;  %v1987_v23 = vpop.permute.xlu0 %517 }
  0xb8   : > { %745 = vrot.lane.b32.xlu1 %v408_v19, %s1600_s6  ;;  %729 = vrot.lane.b32.xlu0 %v388_v21, %s1600_s6 }
  0xba   : > { %v1991_v25 = vpop.permute.xlu1 %584  ;;  %v1993_v30 = vpop.permute.xlu0 %568 }
  0xbc   : > { %350 = vrot.lane.b32.xlu1 %v319_v57, %s1593_s11  ;;  %334 = vrot.lane.b32.xlu0 %v299_v58, %s1593_s11  ;;  %v410_v57 = vsel %vm370_vm1, %v407_v12, %v409_v45  ;;  %v390_v58 = vsel %vm370_vm1, %v387_v14, %v389_v47  ;;  %v2028_v45 = vld [vmem:[%s1700_s10 + $0xc0] sm:$0xff] }
  0xbd   : > { %v510_v50 = vrot.slane %v2028_v45, 1 }
  0xbe   : > { %v1997_v31 = vpop.permute.xlu1 %344  ;;  %v1999_v32 = vpop.permute.xlu0 %328 }
  0xc0   : > { %541 = vrot.lane.b32.xlu1 %v321_v8, %s1596_s24  ;;  %525 = vrot.lane.b32.xlu0 %v301_v9, %s1596_s24 }
  0xc2   : > { %v432_v48 = vpop.permute.xlu1 %431  ;;  %v416_v49 = vpop.permute.xlu0 %415 }
  0xc4   : > { %592 = vrot.lane.b32.xlu1 %v408_v19, %s1597_s27  ;;  %576 = vrot.lane.b32.xlu0 %v388_v21, %s1597_s27 }
  0xc6   : > { %v2007_v3 = vpop.permute.xlu1 %586  ;;  %v2009_v4 = vpop.permute.xlu0 %570 }
  0xc8   : > { %747 = vrot.lane.b32.xlu1 %v410_v57, %s1600_s6  ;;  %731 = vrot.lane.b32.xlu0 %v390_v58, %s1600_s6 }
  0xca   : > { %v2013_v61 = vpop.permute.xlu1 %634  ;;  %v2015_v62 = vpop.permute.xlu0 %618 }
  0xcc   : > { %352 = vrot.lane.b32.xlu1 %v321_v8, %s1593_s11  ;;  %336 = vrot.lane.b32.xlu0 %v301_v9, %s1593_s11  ;;  %s1601_s11 = smov [#allocation2]  }
  0xce   : > { %v2019_v11 = vpop.permute.xlu1 %433  ;;  %v2021_v12 = vpop.permute.xlu0 %417 }
  0xd0   : > { %439 = vrot.lane.b32.xlu1 %v408_v19, %s1594_s20  ;;  %423 = vrot.lane.b32.xlu0 %v388_v21, %s1594_s20 }
  0xd2   : > { %v482_v13 = vpop.permute.xlu1 %481  ;;  %v466_v14 = vpop.permute.xlu0 %465 }
  0xd4   : > { %594 = vrot.lane.b32.xlu1 %v410_v57, %s1597_s27  ;;  %578 = vrot.lane.b32.xlu0 %v390_v58, %s1597_s27 }
  0xd6   : > { %v2030_v8 = vpop.permute.xlu1 %636  ;;  %v2032_v9 = vpop.permute.xlu0 %620 }
  0xd8   : > { %642 = vrot.lane.b32.xlu1 %v2028_v45, %s1598_s28  ;;  %626 = vrot.lane.b32.xlu0 %v1717_v10, %s1598_s28 }
  0xda   : > { %v689_v19 = vpop.permute.xlu1 %688  ;;  %v673_v21 = vpop.permute.xlu0 %672 }
  0xdc   : > { %441 = vrot.lane.b32.xlu1 %v410_v57, %s1594_s20  ;;  %425 = vrot.lane.b32.xlu0 %v390_v58, %s1594_s20  ;;  %v801_v57 = vsel %vm790_vm4, %v784_v35, %v432_v48  ;;  %v793_v58 = vsel %vm790_vm4, %v776_v33, %v416_v49  ;;  %v774_v33 = vsel %vm773_vm3, %v1707_v2, %v1913_v37 }
  0xdd   : > { %v818_v15 = vsel %vm807_vm5, %v801_v57, %v482_v13  ;;  %v810_v42 = vsel %vm807_vm5, %v793_v58, %v466_v14  ;;  %v782_v35 = vsel %vm773_vm3, %v1717_v10, %v1921_v39  ;;  %v512_v49 = vsel %vm281_vm0, %v510_v50, %v511_v46 }
  0xde   : > { %v2040_v47 = vpop.permute.xlu1 %483  ;;  %v2042_v44 = vpop.permute.xlu0 %467  ;;  %v799_v48 = vsel %vm790_vm4, %v782_v35, %v1925_v40  ;;  %v564_v35 = vrot.slane %v2045_v43, 2 }
  0xdf   : > { %v816_v2 = vsel %vm807_vm5, %v799_v48, %v1953_v59 }
  0xe0   : > { %489 = vrot.lane.b32.xlu1 %v2028_v45, %s1595_s21  ;;  %473 = vrot.lane.b32.xlu0 %v1717_v10, %s1595_s21  ;;  %v833_v13 = vsel %vm824_vm6, %v816_v2, %v1969_v5 }
  0xe1   : > { %v850_v50 = vsel %vm841_vm7, %v833_v13, %v1991_v25 }
  0xe2   : > { %v536_v27 = vpop.permute.xlu1 %535  ;;  %v520_v18 = vpop.permute.xlu0 %519  ;;  %v867_v59 = vsel %vm858_vm8, %v850_v50, %v2013_v61 }
  0xe3   : > { %v2062_v34 = vsel %vm824_vm6, %v818_v15, %v536_v27  ;;  %v2065_v55 = vsel %vm824_vm6, %v810_v42, %v520_v18  ;;  %v791_v42 = vsel %vm790_vm4, %v774_v33, %v1927_v41  ;;  %v884_v5 = vsel %vm875_vm9, %v867_v59, %v689_v19 }
  0xe4   : > { %644 = vrot.lane.b32.xlu1 %v2045_v43, %s1598_s28  ;;  %628 = vrot.lane.b32.xlu0 %v1712_v6, %s1598_s28  ;;  %v808_v10 = vsel %vm807_vm5, %v791_v42, %v1955_v60  ;;  %v777_v15 = vsel %vm773_vm3, %v1762_v29, %v1999_v32  ;;  %v563_v27 = vrot.slane %v2028_v45, 2 }
  0xe5   : > { %v825_v40 = vsel %vm824_vm6, %v808_v10, %v1971_v7  ;;  %v794_v33 = vsel %vm790_vm4, %v777_v15, %v2021_v12 }
  0xe6   : > { %v691_v37 = vpop.permute.xlu1 %690  ;;  %v675_v39 = vpop.permute.xlu0 %674  ;;  %v842_v41 = vsel %vm841_vm7, %v825_v40, %v1993_v30  ;;  %v253_v30 = vld [vmem:[%s1700_s10 + $0xd0] sm:$0x3]  ;;  %v811_v32 = vsel %vm807_vm5, %v794_v33, %v2042_v44 }
  0xe7   : > { %v859_v60 = vsel %vm858_vm8, %v842_v41, %v2015_v62  ;;  %v513_v61 = vrot.slane %v253_v30, 1 }
  0xe8   : > { %696 = vrot.lane.b32.xlu1 %v512_v49, %s1599_s29  ;;  %680 = vrot.lane.b32.xlu0 %v1730_v17, %s1599_s29  ;;  %v876_v7 = vsel %vm875_vm9, %v859_v60, %v673_v21  ;;  %v785_v21 = vsel %vm773_vm3, %v1759_v28, %v1997_v31 }
  0xe9   : > { %v802_v18 = vsel %vm790_vm4, %v785_v21, %v2019_v11  ;;  %v514_v31 = vsel %vm281_vm0, %v511_v46, %v513_v61  ;;  %v783_v46 = vsel %vm773_vm3, %v1712_v6, %v1919_v38 }
  0xea   : > { %v742_v25 = vpop.permute.xlu1 %741  ;;  %v726_v14 = vpop.permute.xlu0 %725  ;;  %v819_v29 = vsel %vm807_vm5, %v802_v18, %v2040_v47  ;;  %v565_v47 = vsel %vm370_vm1, %v563_v27, %v564_v35 }
  0xeb   : > { %v901_v57 = vsel %vm892_vm10, %v884_v5, %v742_v25  ;;  %v893_v58 = vsel %vm892_vm10, %v876_v7, %v726_v14  ;;  %v255_v7 = vld [vmem:[%s1700_s10 + $0xe0] sm:$0xff] }
  0xec   : > { %491 = vrot.lane.b32.xlu1 %v2045_v43, %s1595_s21  ;;  %1390 = vmatprep.mubr.msk.f32.mxu1 %vm921_vm11, %v901_v57  ;;  %v800_v43 = vsel %vm790_vm4, %v783_v46, %v1943_v51  ;;  %v668_v14 = vrot.slane %v255_v7, 1  ;;  %v2474_v57 = vld [vmem:[#allocation9_spill] sm:$0xff] }
  0xed   : > { %475 = vrot.lane.b32.xlu0 %v1712_v6, %s1595_s21  ;;  %1378 = vmatprep.mubr.msk.f32.mxu0 %vm921_vm11, %v893_v58  ;;  %s1501_s21 = sshll.u32 %s1601_s11, 4  ;;  %s1502_s21 = int_to_ptr.vmem [resolvable:$false] %s1501_s21 }
  0xee   : > { %v347_v62 = vpop.permute.xlu1 %346  ;;  %v331_v19 = vpop.permute.xlu0 %330 }
  0xef   : > { %v786_v13 = vsel %vm773_vm3, %v1820_v52, %v347_v62  ;;  %v254_v52 = vld [vmem:[%s1700_s10 + $0xd8] sm:$0xff] }
  0xf0   : > { %543 = vrot.lane.b32.xlu1 %v512_v49, %s1596_s24  ;;  %v667_v25 = vrot.slane %v254_v52, 1 }
  0xf1   : > { %527 = vrot.lane.b32.xlu0 %v1730_v17, %s1596_s24  ;;  %v775_v17 = vsel %vm773_vm3, %v1703_v0, %v1911_v36  ;;  %v817_v0 = vsel %vm807_vm5, %v800_v43, %v1961_v63 }
  0xf2   : > { %v538_v45 = vpop.permute.xlu1 %537  ;;  %v522_v48 = vpop.permute.xlu0 %521  ;;  %v792_v44 = vsel %vm790_vm4, %v775_v17, %v1945_v56  ;;  %v834_v51 = vsel %vm824_vm6, %v817_v0, %v1985_v22 }
  0xf3   : > { %v2133_v11 = vsel %vm824_vm6, %v819_v29, %v538_v45  ;;  %v2136_v12 = vsel %vm824_vm6, %v811_v32, %v522_v48  ;;  %v809_v36 = vsel %vm807_vm5, %v792_v44, %v1963_v1  ;;  %v851_v42 = vsel %vm841_vm7, %v834_v51, %v2007_v3  ;;  %v2475_v29 = vld [vmem:[#allocation5_spill] sm:$0xff]  ;;  %v2476_v48 = vld [vmem:[#allocation6_spill] sm:$0xff] }
  0xf4   : > { %698 = vrot.lane.b32.xlu1 %v514_v31, %s1599_s29  ;;  %v826_v56 = vsel %vm824_vm6, %v809_v36, %v1987_v23  ;;  %v868_v63 = vsel %vm858_vm8, %v851_v42, %v2030_v8  ;;  %v566_v8 = vrot.slane %v253_v30, 2 }
  0xf5   : > { %682 = vrot.lane.b32.xlu0 %v1727_v16, %s1599_s29  ;;  %v843_v49 = vsel %vm841_vm7, %v826_v56, %v2009_v4  ;;  %v885_v22 = vsel %vm875_vm9, %v868_v63, %v691_v37 }
  0xf6   : > { %v2156_v6 = vpop.permute.xlu1 %588  ;;  %v2158_v38 = vpop.permute.xlu0 %572  ;;  %v860_v1 = vsel %vm858_vm8, %v843_v49, %v2032_v9  ;;  %v2478_v49 = vld [vmem:[#allocation8_spill] sm:$0xff] }
  0xf7   : > { %v877_v23 = vsel %vm875_vm9, %v860_v1, %v675_v39  ;;  %v567_v39 = vsel %vm370_vm1, %v564_v35, %v566_v8  ;;  %v720_v35 = vrot.slane %v254_v52, 2 }
  0xf8   : > { %749 = vrot.lane.b32.xlu1 %v565_v47, %s1600_s6 }
  0xf9   : > { %733 = vrot.lane.b32.xlu0 %v1739_v20, %s1600_s6 }
  0xfa   : > { %v744_v2 = vpop.permute.xlu1 %743  ;;  %v728_v3 = vpop.permute.xlu0 %727 }
  0xfb   : > { %v902_v10 = vsel %vm892_vm10, %v885_v22, %v744_v2  ;;  %v894_v4 = vsel %vm892_vm10, %v877_v23, %v728_v3 }
  0xfc   : > { %545 = vrot.lane.b32.xlu1 %v514_v31, %s1596_s24  ;;  %1391 = vmatmul.mubr.msk.f32.vlgmr.msra.gmra.mrb[0].mxu1 %vm921_vm11, %v902_v10  ;;  %v721_v31 = vrot.slane %v255_v7, 2  ;;  %v852_v10 = vsel %vm841_vm7, %v2062_v34, %v2156_v6 }
  0xfd   : > { %529 = vrot.lane.b32.xlu0 %v1727_v16, %s1596_s24  ;;  %1379 = vmatmul.mubr.msk.f32.vlgmr.msra.gmra.mrb[0].mxu0 %vm921_vm11, %v894_v4  ;;  %v778_v16 = vsel %vm773_vm3, %v1823_v53, %v331_v19  ;;  %v844_v4 = vsel %vm841_vm7, %v2065_v55, %v2158_v38 }
  0xfe   : > { %v349_v9 = vpop.permute.xlu1 %348  ;;  %v333_v37 = vpop.permute.xlu0 %332  ;;  %v722_v17 = vsel %vm370_vm1, %v720_v35, %v721_v31 }
  0xff   : > { %v787_v30 = vsel %vm773_vm3, %v1833_v54, %v349_v9  ;;  %v779_v58 = vsel %vm773_vm3, %v2474_v57, %v333_v37 }
 0x100   : > { %596 = vrot.lane.b32.xlu1 %v565_v47, %s1597_s27  ;;  %v2477_v47 = vld [vmem:[#allocation7_spill] sm:$0xff] }
 0x101   : > { %580 = vrot.lane.b32.xlu0 %v1739_v20, %s1597_s27 }
 0x102   : > { %v436_v40 = vpop.permute.xlu1 %435  ;;  %v420_v50 = vpop.permute.xlu0 %419 }
 0x103   : > { %v803_v41 = vsel %vm790_vm4, %v786_v13, %v436_v40  ;;  %v795_v59 = vsel %vm790_vm4, %v778_v16, %v420_v50 }
 0x104   : > { %751 = vrot.lane.b32.xlu1 %v567_v39, %s1600_s6 }
 0x105   : > { %735 = vrot.lane.b32.xlu0 %v1746_v24, %s1600_s6 }
 0x106   : > { %v2197_v20 = vpop.permute.xlu1 %590  ;;  %v2199_v60 = vpop.permute.xlu0 %574 }
 0x108   : > { %598 = vrot.lane.b32.xlu1 %v567_v39, %s1597_s27 }
 0x109   : > { %582 = vrot.lane.b32.xlu0 %v1746_v24, %s1597_s27  ;;  %v256_v24 = vld [vmem:[%s1700_s10 + $0xe8] sm:$0x3]  ;;  %s208_s10 = sand.u32 1, %s1567_s13  }
 0x10a   : > { %v639_v53 = vpop.permute.xlu1 %638  ;;  %v623_v5 = vpop.permute.xlu0 %622  ;;  %v670_v15 = vrot.slane %v256_v24, 1  ;;  %v723_v46 = vrot.slane %v256_v24, 2  ;;  %s1317_s24 = sshll.u32 %s208_s10, 7  ;;  %s2397_s7 = scalar_lea.sflag [#allocation3], %s208_s10 }
 0x10b   : > { %v869_v8 = vsel %vm858_vm8, %v852_v10, %v639_v53  ;;  %v861_v9 = vsel %vm858_vm8, %v844_v4, %v623_v5  ;;  %v853_v5 = vsel %vm841_vm7, %v2133_v11, %v2197_v20  ;;  %v2479_v20 = vld [vmem:[#allocation10_spill] sm:$0xff]  ;;  %s2355_s27 = scalar_lea.vmem [#allocation2], %s1317_s24  ;;  %s1503_s24 = scalar_lea.vmem %s1502_s21, 4096 }
 0x10c   : > { %646 = vrot.lane.b32.xlu1 %v254_v52, %s1598_s28  ;;  %v671_v32 = vsel %vm281_vm0, %v668_v14, %v670_v15  ;;  %v724_v0 = vsel %vm370_vm1, %v721_v31, %v723_v46 }
 0x10d   : > { %630 = vrot.lane.b32.xlu0 %v1753_v26, %s1598_s28  ;;  %v669_v26 = vsel %vm281_vm0, %v667_v25, %v668_v14 }
 0x10e   : > { %v438_v61 = vpop.permute.xlu1 %437  ;;  %v422_v62 = vpop.permute.xlu0 %421 }
 0x10f   : > { %v804_v19 = vsel %vm790_vm4, %v787_v30, %v438_v61  ;;  %v796_v21 = vsel %vm790_vm4, %v779_v58, %v422_v62 }
 0x110   : > { %648 = vrot.lane.b32.xlu1 %v255_v7, %s1598_s28  ;;  %v845_v7 = vsel %vm841_vm7, %v2136_v12, %v2199_v60 }
 0x111   : > { %632 = vrot.lane.b32.xlu0 %v1759_v28, %s1598_s28  ;;  %s1346_s28 = sshll.u32 %s1575_s15, 4  ;;  %s1201_s15 = sshll.u32 %s2355_s27, 4  ;;  %s2390_s15 = int_to_ptr.vmem [resolvable:$true] %s1201_s15 }
 0x112   : > { %v486_v27 = vpop.permute.xlu1 %485  ;;  %v470_v54 = vpop.permute.xlu0 %469  ;;  %s1497_s8 = scalar_lea.vmem %s2390_s15, 2048  ;;  %p1504_p2 = scmp.lt.s32.totalorder %s2390_s15, %s1502_s21 }
 0x113   : > { %v820_v18 = vsel %vm807_vm5, %v803_v41, %v486_v27  ;;  %v812_v33 = vsel %vm807_vm5, %v795_v59, %v470_v54  ;;  %p1498_p13 = scmp.ne.s32.totalorder %s2390_s15, %s1497_s8  ;;  %p1505_p4 = scmp.lt.s32.totalorder %s1503_s24, %s1497_s8 }
 0x114   : > { %700 = vrot.lane.b32.xlu1 %v669_v26, %s1599_s29 }
 0x115   : > { %684 = vrot.lane.b32.xlu0 %v2475_v29, %s1599_s29  ;;  %p1499_p0 = pnand %p1498_p13, %p1674_p3  ;;  %p1506_p5 = por %p1505_p4, %p1504_p2 }
 0x116   : > { %v641_v45 = vpop.permute.xlu1 %640  ;;  %v625_v28 = vpop.permute.xlu0 %624 }
 0x117   : > { %v870_v25 = vsel %vm858_vm8, %v853_v5, %v641_v45  ;;  %v862_v14 = vsel %vm858_vm8, %v845_v7, %v625_v28  ;;  %p1500_p1 = pneg %p1499_p0 }
 0x118   : > { %702 = vrot.lane.b32.xlu1 %v671_v32, %s1599_s29 }
 0x119   : > { %686 = vrot.lane.b32.xlu0 %v2476_v48, %s1599_s29  ;;  %s1342_s29 = sshll.u32 %s1579_s16, 5  ;;  %p1507_p6 = pnand %p1506_p5, %p1500_p1 }
 0x11a   : > { %v693_v43 = vpop.permute.xlu1 %692  ;;  %v677_v44 = vpop.permute.xlu0 %676  ;;  %s1198_s9 = sadd.s32 %s1346_s28, %s1342_s29 }
 0x11b   : > { %v886_v37 = vsel %vm875_vm9, %v869_v8, %v693_v43  ;;  %v878_v39 = vsel %vm875_vm9, %v861_v9, %v677_v44  ;;  %s1343_s4 = sshll.u32 %s1198_s9, 7 }
 0x11c   : > { %753 = vrot.lane.b32.xlu1 %v722_v17, %s1600_s6 }
 0x11d   : > { %737 = vrot.lane.b32.xlu0 %v2477_v47, %s1600_s6 }
 0x11e   : > { %v488_v36 = vpop.permute.xlu1 %487  ;;  %v472_v51 = vpop.permute.xlu0 %471 }
 0x11f   : > { %v821_v56 = vsel %vm807_vm5, %v804_v19, %v488_v36  ;;  %v813_v42 = vsel %vm807_vm5, %v796_v21, %v472_v51  ;;  %v2480_v19 = vld [vmem:[#allocation11_spill] sm:$0xff] }
 0x120   : > { %755 = vrot.lane.b32.xlu1 %v724_v0, %s1600_s6 }
 0x121   : > { %739 = vrot.lane.b32.xlu0 %v2478_v49, %s1600_s6  ;;  %s2387_s6 = scalar_lea.hbm %s2453_s3, %s1343_s4 }
 0x122   : > { %v540_v63 = vpop.permute.xlu1 %539  ;;  %v524_v1 = vpop.permute.xlu0 %523 }
 0x123   : > { %v2240_v22 = vsel %vm824_vm6, %v820_v18, %v540_v63  ;;  %v2243_v23 = vsel %vm824_vm6, %v812_v33, %v524_v1 }
 0x126   : > { %v695_v2 = vpop.permute.xlu1 %694  ;;  %v679_v3 = vpop.permute.xlu0 %678 }
 0x127   : > { %v887_v30 = vsel %vm875_vm9, %v870_v25, %v695_v2  ;;  %v879_v57 = vsel %vm875_vm9, %v862_v14, %v679_v3 }
 0x12a   : > { %v746_v13 = vpop.permute.xlu1 %745  ;;  %v730_v16 = vpop.permute.xlu0 %729 }
 0x12b   : > { %v903_v40 = vsel %vm892_vm10, %v886_v37, %v746_v13  ;;  %v895_v50 = vsel %vm892_vm10, %v878_v39, %v730_v16 }
 0x12c   : > { %1381 = vmatprep.mubr.msk.f32.mxu0 %vm921_vm11, %v895_v50  ;;  %1393 = vmatprep.mubr.msk.f32.mxu1 %vm921_vm11, %v903_v40 }
 0x12e   : > { %v351_v34 = vpop.permute.xlu1 %350  ;;  %v335_v55 = vpop.permute.xlu0 %334 }
 0x12f   : > { %v788_v60 = vsel %vm773_vm3, %v2479_v20, %v351_v34  ;;  %v780_v21 = vsel %vm773_vm3, %v2480_v19, %v335_v55 }
 0x132   : > { %v542_v6 = vpop.permute.xlu1 %541  ;;  %v526_v38 = vpop.permute.xlu0 %525 }
 0x133   : > { %v838_v41 = vsel %vm824_vm6, %v821_v56, %v542_v6  ;;  %v830_v59 = vsel %vm824_vm6, %v813_v42, %v526_v38 }
 0x136   : > { %v593_v52 = vpop.permute.xlu1 %592  ;;  %v577_v53 = vpop.permute.xlu0 %576 }
 0x137   : > { %v854_v42 = vsel %vm841_vm7, %v2240_v22, %v593_v52  ;;  %v846_v49 = vsel %vm841_vm7, %v2243_v23, %v577_v53 }
 0x13a   : > { %v748_v58 = vpop.permute.xlu1 %747  ;;  %v732_v61 = vpop.permute.xlu0 %731 }
 0x13b   : > { %v904_v62 = vsel %vm892_vm10, %v887_v30, %v748_v58  ;;  %v896_v24 = vsel %vm892_vm10, %v879_v57, %v732_v61 }
 0x13c   : > { %1382 = vmatmul.mubr.msk.f32.gmra.mrb[2].mxu0 %vm921_vm11, %v896_v24  ;;  %1394 = vmatmul.mubr.msk.f32.gmra.mrb[2].mxu1 %vm921_vm11, %v904_v62 }
 0x13e   : > { %v2275_v11 = vpop.permute.xlu1 %352  ;;  %v2277_v12 = vpop.permute.xlu0 %336 }
 0x142   : > { %v440_v26 = vpop.permute.xlu1 %439  ;;  %v424_v15 = vpop.permute.xlu0 %423 }
 0x143   : > { %v805_v27 = vsel %vm790_vm4, %v788_v60, %v440_v26  ;;  %v797_v54 = vsel %vm790_vm4, %v780_v21, %v424_v15  ;;  %v2481_v60 = vld [vmem:[#allocation12_spill] sm:$0xff]  ;;  %v2482_v15 = vld [vmem:[#allocation13_spill] sm:$0xff] }
 0x144   : > { %v789_v19 = vsel %vm773_vm3, %v2481_v60, %v2275_v11 }
 0x146   : > { %v595_v18 = vpop.permute.xlu1 %594  ;;  %v579_v33 = vpop.permute.xlu0 %578 }
 0x147   : > { %v855_v13 = vsel %vm841_vm7, %v838_v41, %v595_v18  ;;  %v847_v16 = vsel %vm841_vm7, %v830_v59, %v579_v33  ;;  %v781_v18 = vsel %vm773_vm3, %v2482_v15, %v2277_v12 }
 0x14a   : > { %v643_v35 = vpop.permute.xlu1 %642  ;;  %v627_v31 = vpop.permute.xlu0 %626 }
 0x14b   : > { %v871_v63 = vsel %vm858_vm8, %v854_v42, %v643_v35  ;;  %v863_v1 = vsel %vm858_vm8, %v846_v49, %v627_v31 }
 0x14e   : > { %v442_v29 = vpop.permute.xlu1 %441  ;;  %v426_v32 = vpop.permute.xlu0 %425 }
 0x14f   : > { %v798_v35 = vsel %vm790_vm4, %v781_v18, %v426_v32 }
 0x152   : > { %v490_v45 = vpop.permute.xlu1 %489  ;;  %v474_v28 = vpop.permute.xlu0 %473 }
 0x153   : > { %v822_v58 = vsel %vm807_vm5, %v805_v27, %v490_v45  ;;  %v814_v62 = vsel %vm807_vm5, %v797_v54, %v474_v28  ;;  %v806_v27 = vsel %vm790_vm4, %v789_v19, %v442_v29 }
 0x156   : > { %v645_v48 = vpop.permute.xlu1 %644  ;;  %v629_v17 = vpop.permute.xlu0 %628 }
 0x157   : > { %v872_v40 = vsel %vm858_vm8, %v855_v13, %v645_v48  ;;  %v864_v50 = vsel %vm858_vm8, %v847_v16, %v629_v17 }
 0x15a   : > { %v697_v46 = vpop.permute.xlu1 %696  ;;  %v681_v43 = vpop.permute.xlu0 %680 }
 0x15b   : > { %v888_v2 = vsel %vm875_vm9, %v871_v63, %v697_v46  ;;  %v880_v10 = vsel %vm875_vm9, %v863_v1, %v681_v43 }
 0x15e   : > { %v492_v44 = vpop.permute.xlu1 %491 }
 0x15f   : > { %v476_v47 = vpop.permute.xlu0 %475  ;;  %v823_v31 = vsel %vm807_vm5, %v806_v27, %v492_v44 }
 0x160   : > { %v815_v48 = vsel %vm807_vm5, %v798_v35, %v476_v47 }
 0x162   : > { %v544_v0 = vpop.permute.xlu1 %543 }
 0x163   : > { %v528_v36 = vpop.permute.xlu0 %527  ;;  %v839_v24 = vsel %vm824_vm6, %v822_v58, %v544_v0 }
 0x164   : > { %v831_v21 = vsel %vm824_vm6, %v814_v62, %v528_v36 }
 0x166   : > { %v699_v51 = vpop.permute.xlu1 %698 }
 0x167   : > { %v683_v56 = vpop.permute.xlu0 %682  ;;  %v889_v34 = vsel %vm875_vm9, %v872_v40, %v699_v51 }
 0x168   : > { %v881_v6 = vsel %vm875_vm9, %v864_v50, %v683_v56 }
 0x16a   : > { %v750_v3 = vpop.permute.xlu1 %749 }
 0x16b   : > { %v905_v4 = vsel %vm892_vm10, %v888_v2, %v750_v3  ;;  %v734_v8 = vpop.permute.xlu0 %733  ;;  %v2347_v2 = vld [vmem:[%s2452_s2] ss:$0 sm:$0xff] }
 0x16c   : > { %v897_v9 = vsel %vm892_vm10, %v880_v10, %v734_v8  ;;  %1396 = vmatprep.mubr.msk.f32.mxu1 %vm921_vm11, %v905_v4 }
 0x16d   : > { %1384 = vmatprep.mubr.msk.f32.mxu0 %vm921_vm11, %v897_v9 }
 0x16e   : > { %v546_v22 = vpop.permute.xlu1 %545 }
 0x16f   : > { %v530_v23 = vpop.permute.xlu0 %529  ;;  %v840_v17 = vsel %vm824_vm6, %v823_v31, %v546_v22 }
 0x170   : > { %v832_v43 = vsel %vm824_vm6, %v815_v48, %v530_v23 }
 0x172   : > { %v597_v37 = vpop.permute.xlu1 %596 }
 0x173   : > { %v581_v39 = vpop.permute.xlu0 %580  ;;  %v856_v26 = vsel %vm841_vm7, %v839_v24, %v597_v37 }
 0x174   : > { %v848_v33 = vsel %vm841_vm7, %v831_v21, %v581_v39 }
 0x176   : > { %v752_v55 = vpop.permute.xlu1 %751 }
 0x177   : > { %v906_v38 = vsel %vm892_vm10, %v889_v34, %v752_v55  ;;  %v736_v52 = vpop.permute.xlu0 %735 }
 0x178   : > { %v898_v53 = vsel %vm892_vm10, %v881_v6, %v736_v52  ;;  %1397 = vmatmul.mubr.msk.f32.gmra.mrb[4].mxu1 %vm921_vm11, %v906_v38 }
 0x179   : > { %1385 = vmatmul.mubr.msk.f32.gmra.mrb[4].mxu0 %vm921_vm11, %v898_v53 }
 0x17a   : > { %v599_v41 = vpop.permute.xlu1 %598 }
 0x17b   : > { %v583_v59 = vpop.permute.xlu0 %582  ;;  %v857_v32 = vsel %vm841_vm7, %v840_v17, %v599_v41 }
 0x17c   : > { %v849_v0 = vsel %vm841_vm7, %v832_v43, %v583_v59 }
 0x17e   : > { %v647_v5 = vpop.permute.xlu1 %646 }
 0x17f   : > { %v631_v7 = vpop.permute.xlu0 %630  ;;  %v873_v54 = vsel %vm858_vm8, %v856_v26, %v647_v5 }
 0x180   : > { %v865_v11 = vsel %vm858_vm8, %v848_v33, %v631_v7 }
 0x182   : > { %v649_v25 = vpop.permute.xlu1 %648 }
 0x183   : > { %v633_v14 = vpop.permute.xlu0 %632  ;;  %v874_v47 = vsel %vm858_vm8, %v857_v32, %v649_v25 }
 0x184   : > { %v866_v36 = vsel %vm858_vm8, %v849_v0, %v633_v14 }
 0x186   : > { %v701_v30 = vpop.permute.xlu1 %700 }
 0x187   : > { %v685_v57 = vpop.permute.xlu0 %684  ;;  %v890_v45 = vsel %vm875_vm9, %v873_v54, %v701_v30 }
 0x188   : > { %v882_v12 = vsel %vm875_vm9, %v865_v11, %v685_v57 }
 0x18a   : > { %v703_v61 = vpop.permute.xlu1 %702 }
 0x18b   : > { %v687_v20 = vpop.permute.xlu0 %686  ;;  %v891_v51 = vsel %vm875_vm9, %v874_v47, %v703_v61 }
 0x18c   : > { %v883_v42 = vsel %vm875_vm9, %v866_v36, %v687_v20 }
 0x18e   : > { %v754_v28 = vpop.permute.xlu1 %753 }
 0x18f   : > { %v907_v29 = vsel %vm892_vm10, %v890_v45, %v754_v28  ;;  %v738_v46 = vpop.permute.xlu0 %737 }
 0x190   : > { %v899_v44 = vsel %vm892_vm10, %v882_v12, %v738_v46  ;;  %1399 = vmatprep.mubr.msk.f32.mxu1 %vm921_vm11, %v907_v29 }
 0x191   : > { %1387 = vmatprep.mubr.msk.f32.mxu0 %vm921_vm11, %v899_v44 }
 0x192   : > { %v756_v56 = vpop.permute.xlu1 %755 }
 0x193   : > { %v908_v49 = vsel %vm892_vm10, %v891_v51, %v756_v56  ;;  %v740_v63 = vpop.permute.xlu0 %739 }
 0x194   : > { %v900_v1 = vsel %vm892_vm10, %v883_v42, %v740_v63  ;;  %1400 = vmatmul.mubr.msk.f32.gmra.mrb[6].mxu1 %vm921_vm11, %v908_v49 }
 0x195   : > { %1388 = vmatmul.mubr.msk.f32.gmra.mrb[6].mxu0 %vm921_vm11, %v900_v1 }
 0x1cf   : > { %v1392_v3 = vpop.f32.mrb[0].mxu1 }
 0x1d0   : > { %v1380_v10 = vpop.f32.mrb[0].mxu0  ;;  %v1086_v4 = vadd.f32 %v1392_v3, %v2347_v2  ;;  %v1080_v8 = vpop.f32.mrb[1].mxu1 }
 0x1d1   : > { %v1046_v9 = vadd.f32 %v1380_v10, %v2347_v2  ;;  %v1040_v22 = vpop.f32.mrb[1].mxu0  ;;  %v1081_v23 = vadd.f32 %v2347_v2, %v1080_v8 }
 0x1d2   : > { %vm1128_vm12 = vcmp.ge.f32.partialorder %v1086_v4, 0.0  ;;  %v1144_v37 = vmul.f32 0.1, %v1086_v4  ;;  %v1041_v39 = vadd.f32 %v2347_v2, %v1040_v22 }
 0x1d3   : > { %vm1120_vm13 = vcmp.ge.f32.partialorder %v1046_v9, 0.0  ;;  %v1136_v13 = vmul.f32 0.1, %v1046_v9  ;;  %vm1127_vm14 = vcmp.ge.f32.partialorder %v1081_v23, 0.0  ;;  %v1143_v16 = vmul.f32 0.1, %v1081_v23 }
 0x1d4   : > { %v1160_v40 = vsel %vm1128_vm12, %v1086_v4, %v1144_v37  ;;  %vm1119_vm15 = vcmp.ge.f32.partialorder %v1041_v39, 0.0  ;;  %v1135_v50 = vmul.f32 0.1, %v1041_v39 }
 0x1d5   : > { %v1152_v34 = vsel %vm1120_vm13, %v1046_v9, %v1136_v13  ;;  %1176 = vst [vmem:[%s2355_s27 + $0x48] sm:$0xff] %v1160_v40  ;;  %v1159_v55 = vsel %vm1127_vm14, %v1081_v23, %v1143_v16 }
 0x1d6   : > { %1168 = vst [vmem:[%s2355_s27 + $0x8] sm:$0xff] %v1152_v34  ;;  %v1151_v6 = vsel %vm1119_vm15, %v1041_v39, %v1135_v50  ;;  %1175 = vst [vmem:[%s2355_s27 + $0x40] sm:$0xff] %v1159_v55 }
 0x1d7   : > { %1167 = vst [vmem:[%s2355_s27] sm:$0xff] %v1151_v6 }
 0x20f   : > { %v1383_v38 = vpop.f32.mrb[2].mxu0  ;;  %v1395_v52 = vpop.f32.mrb[2].mxu1 }
 0x210   : > { %v1056_v53 = vadd.f32 %v1383_v38, %v2347_v2  ;;  %v1096_v41 = vadd.f32 %v1395_v52, %v2347_v2  ;;  %v1050_v59 = vpop.f32.mrb[3].mxu0  ;;  %v1090_v5 = vpop.f32.mrb[3].mxu1 }
 0x211   : > { %v1051_v7 = vadd.f32 %v2347_v2, %v1050_v59  ;;  %v1091_v25 = vadd.f32 %v2347_v2, %v1090_v5 }
 0x212   : > { %vm1122_vm0 = vcmp.ge.f32.partialorder %v1056_v53, 0.0  ;;  %v1138_v14 = vmul.f32 0.1, %v1056_v53  ;;  %vm1130_vm1 = vcmp.ge.f32.partialorder %v1096_v41, 0.0  ;;  %v1146_v30 = vmul.f32 0.1, %v1096_v41 }
 0x213   : > { %vm1121_vm2 = vcmp.ge.f32.partialorder %v1051_v7, 0.0  ;;  %v1137_v57 = vmul.f32 0.1, %v1051_v7  ;;  %vm1129_vm3 = vcmp.ge.f32.partialorder %v1091_v25, 0.0  ;;  %v1145_v58 = vmul.f32 0.1, %v1091_v25 }
 0x214   : > { %v1154_v61 = vsel %vm1122_vm0, %v1056_v53, %v1138_v14  ;;  %v1162_v62 = vsel %vm1130_vm1, %v1096_v41, %v1146_v30 }
 0x215   : > { %1170 = vst [vmem:[%s2355_s27 + $0x18] sm:$0xff] %v1154_v61  ;;  %1178 = vst [vmem:[%s2355_s27 + $0x58] sm:$0xff] %v1162_v62  ;;  %v1153_v24 = vsel %vm1121_vm2, %v1051_v7, %v1137_v57  ;;  %v1161_v20 = vsel %vm1129_vm3, %v1091_v25, %v1145_v58 }
 0x216   : > { %1169 = vst [vmem:[%s2355_s27 + $0x10] sm:$0xff] %v1153_v24  ;;  %1177 = vst [vmem:[%s2355_s27 + $0x50] sm:$0xff] %v1161_v20 }
 0x24b   : > { %v1398_v60 = vpop.f32.mrb[4].mxu1 }
 0x24c   : > { %v1386_v19 = vpop.f32.mrb[4].mxu0  ;;  %v1106_v21 = vadd.f32 %v1398_v60, %v2347_v2  ;;  %v1100_v26 = vpop.f32.mrb[5].mxu1 }
 0x24d   : > { %v1066_v15 = vadd.f32 %v1386_v19, %v2347_v2  ;;  %v1060_v18 = vpop.f32.mrb[5].mxu0  ;;  %v1101_v27 = vadd.f32 %v2347_v2, %v1100_v26 }
 0x24e   : > { %vm1132_vm4 = vcmp.ge.f32.partialorder %v1106_v21, 0.0  ;;  %v1148_v33 = vmul.f32 0.1, %v1106_v21  ;;  %v1061_v54 = vadd.f32 %v2347_v2, %v1060_v18 }
 0x24f   : > { %vm1124_vm5 = vcmp.ge.f32.partialorder %v1066_v15, 0.0  ;;  %v1140_v35 = vmul.f32 0.1, %v1066_v15  ;;  %vm1131_vm6 = vcmp.ge.f32.partialorder %v1101_v27, 0.0  ;;  %v1147_v31 = vmul.f32 0.1, %v1101_v27 }
 0x250   : > { %v1164_v11 = vsel %vm1132_vm4, %v1106_v21, %v1148_v33  ;;  %vm1123_vm7 = vcmp.ge.f32.partialorder %v1061_v54, 0.0  ;;  %v1139_v45 = vmul.f32 0.1, %v1061_v54 }
 0x251   : > { %v1156_v28 = vsel %vm1124_vm5, %v1066_v15, %v1140_v35  ;;  %1180 = vst [vmem:[%s2355_s27 + $0x68] sm:$0xff] %v1164_v11  ;;  %v1163_v48 = vsel %vm1131_vm6, %v1101_v27, %v1147_v31 }
 0x252   : > { %1172 = vst [vmem:[%s2355_s27 + $0x28] sm:$0xff] %v1156_v28  ;;  %v1155_v17 = vsel %vm1123_vm7, %v1061_v54, %v1139_v45  ;;  %1179 = vst [vmem:[%s2355_s27 + $0x60] sm:$0xff] %v1163_v48 }
 0x253   : > { %1171 = vst [vmem:[%s2355_s27 + $0x20] sm:$0xff] %v1155_v17 }
 0x267   : > { %v1401_v12 = vpop.f32.mrb[6].mxu1 }
 0x268   : > { %v1389_v29 = vpop.f32.mrb[6].mxu0  ;;  %v1116_v46 = vadd.f32 %v1401_v12, %v2347_v2  ;;  %v1110_v43 = vpop.f32.mrb[7].mxu1 }
 0x269   : > { %v1076_v32 = vadd.f32 %v1389_v29, %v2347_v2  ;;  %v1070_v44 = vpop.f32.mrb[7].mxu0  ;;  %v1111_v0 = vadd.f32 %v2347_v2, %v1110_v43 }
 0x26a   : > { %vm1134_vm8 = vcmp.ge.f32.partialorder %v1116_v46, 0.0  ;;  %v1150_v47 = vmul.f32 0.1, %v1116_v46  ;;  %v1071_v36 = vadd.f32 %v2347_v2, %v1070_v44 }
 0x26b   : > { %vm1126_vm9 = vcmp.ge.f32.partialorder %v1076_v32, 0.0  ;;  %v1142_v51 = vmul.f32 0.1, %v1076_v32  ;;  %vm1133_vm10 = vcmp.ge.f32.partialorder %v1111_v0, 0.0  ;;  %v1149_v56 = vmul.f32 0.1, %v1111_v0 }
 0x26c   : > { %v1166_v42 = vsel %vm1134_vm8, %v1116_v46, %v1150_v47  ;;  %vm1125_vm11 = vcmp.ge.f32.partialorder %v1071_v36, 0.0  ;;  %v1141_v49 = vmul.f32 0.1, %v1071_v36 }
 0x26d   : > { %v1158_v63 = vsel %vm1126_vm9, %v1076_v32, %v1142_v51  ;;  %1182 = vst [vmem:[%s2355_s27 + $0x78] sm:$0xff] %v1166_v42  ;;  %v1165_v1 = vsel %vm1133_vm10, %v1111_v0, %v1149_v56 }
 0x26e   : > { %1174 = vst [vmem:[%s2355_s27 + $0x38] sm:$0xff] %v1158_v63  ;;  %v1157_v2 = vsel %vm1125_vm11, %v1071_v36, %v1141_v49  ;;  %1181 = vst [vmem:[%s2355_s27 + $0x70] sm:$0xff] %v1165_v1 }
 0x26f   : > { %1173 = vst [vmem:[%s2355_s27 + $0x30] sm:$0xff] %v1157_v2 }
 0x270   : > { %1510 = shalt.err (!%p1507_p6)
}
 0x271   : > { %s1511_s10 = scalar_lea.hbm %s2387_s6, 2048  ;;  %s1515_s29 = scalar_lea.hbm %s2453_s3, 8192 }
 0x272   : > { %p1512_p7 = scmp.ne.s32.totalorder %s2387_s6, %s1511_s10  ;;  %p1516_p11 = scmp.lt.u32.totalorder %s2387_s6, %s2453_s3 }
 0x273   : > { %p1517_p12 = scmp.lt.u32.totalorder %s1515_s29, %s1511_s10  ;;  %p1519_p0 = scmp.lt.u32.totalorder %s1511_s10, %s2387_s6 }
 0x274   : > { %p1513_p9 = pnand %p1512_p7, %p1674_p3 }
 0x275   : > { %p1518_p13 = por %p1517_p12, %p1516_p11 }
 0x276   : > { %p1514_p10 = pneg %p1513_p9 }
 0x277   : > { %p1520_p1 = por %p1519_p0, %p1518_p13 }
 0x279   : > { %p1521_p2 = pnand %p1520_p1, %p1514_p10 }
 0x27b   : > { %1524 = shalt.err (!%p1521_p2)
}
 0x27c   : > { %s1602_s16 = smov 128  }
 0x27d   : > { %1417 = dma.vmem_to_hbm [thread:$0]  (%p1674_p3), %s2390_s15, 2048, %s2387_s6, %s2397_s7, %s1602_s16, %s1602_s16, %s1594_s20  }
 0x27e PF: > { %p1423_p4 = scmp.ge.s32.totalorder %s1591_s19, 2  ;;  %s1216_s5 = sand.u32 1, %s1563_s12  }
 0x27f   : > { %s1217_s8 = scalar_lea.sflag [#allocation3], %s1216_s5 }
 0x280   : > { %p1420_p5 = pnand %p1423_p4, %p1683_p8 }
 0x282   : > { %1558 = dma.done.wait (!%p1420_p5), %s1217_s8, 2048  }
 0x283   : > { %1560 = vsyncadd (!%p1420_p5), %s1217_s8, 4294965248  ;;  %s16_s19 = sadd.s32 1, %s1591_s19   ;;  %s2483_s12 = smov %s1567_s13 }
 0x284   : > { %p13_p6 = scmp.ge.s32.totalorder %s16_s19, 6   ;;  %s2484_s13 = smov %s1571_s14 }
 0x285   : > { %s2485_s14 = smov %s1692_s30  ;;  %s2486_s15 = smov %s1583_s17 }
 0x286   : > { %s2487_s16 = smov %s1587_s18  ;;  %s2488_s17 = smov %s2491_s22 }
 0x287   : > { %s2489_s18 = smov %s2495_s23  ;;  %15 = sbr.rel (!%p13_p6) target bundleno = 5 (0x5), region = 74 }
 0x28e   :  { %1222 = vsyncpa [#allocation3], 1 }
 0x28f   :  { %1224 = vsyncpa [#allocation3 + $0x1], 1 }

</bundles_post_ra>
